<compile_context>
chip_gen: v6e
topology: v6e:2x2x1
jax: 0.10.0
libtpu: 0.0.40
codegen_flags: <defaults>
</compile_context>

<pallas_src>
import numpy as np
import jax
import jax.numpy as jnp
from jax import lax
from jax.experimental import pallas as pl
from jax.experimental.pallas import tpu as pltpu

# ----- module hyper-parameters (small, consistent with TextCNN_fastText) -----
L = 16             # sequence length (conv spatial H)
E = 32             # embedding_dim (conv spatial W == kernel W)
C = 8              # out_channels per filter size
FSZS = (2, 3, 4)   # filter_sizes = "2,3,4"
LBL = 4            # label_num
F_TOT = len(FSZS) * C            # 24 concatenated conv channels

assert L >= max(FSZS), "every conv branch needs >= 1 valid position (PyTorch would error otherwise)"

MAX_FSZ = max(FSZS)              # 4
TMAX = L - min(FSZS) + 1         # 15 valid conv positions (widest branch)
TPAD = ((TMAX + 7) // 8) * 8     # 16: conv positions, sublane aligned
LPAD = ((TPAD + MAX_FSZ - 1 + 7) // 8) * 8   # 24: padded seq length
KPACK = MAX_FSZ * E              # 128: im2col contraction dim (fills MXU lanes)
CPAD = 128                       # padded conv-channel dim (F_TOT=24 real)
OPAD = 128                       # padded logits dim (LBL=4 real)
NEG = -1e30                      # additive mask for invalid conv positions (keep f32!)

TN = 8                           # batch rows per grid step (multiple of 8);
                                 # keeps the (TN*TPAD, CPAD) f32 conv temp at 64 KiB

# aux array layout (AUX_ROWS x 128), all f32:
#   rows [0, TPAD)        : additive position/validity mask
#   row  BCONV_ROW (=16)  : packed conv bias (24 real cols)
#   row  BLIN_ROW  (=24)  : packed linear bias (4 real cols)
BCONV_ROW = TPAD                 # 16 (8-aligned)
BLIN_ROW = TPAD + 8              # 24 (8-aligned)
AUX_ROWS = TPAD + 16             # 32

assert KPACK == 128, "im2col contraction dim is sized to fill the 128-lane MXU"
assert LPAD >= TPAD + MAX_FSZ - 1


def textcnn_kernel(x_ref, wpack_ref, wlin_ref, aux_ref, out_ref, patch_ref):
    """Fused im2col conv + masked global max pool + (hoisted) bias/ReLU + linear.

    Per grid step: TN batch rows.  x_ref (TN, LPAD, E) f32; wpack/wlin bf16
    (128,128); aux f32 (32,128); out (TN, OPAD) f32; patch scratch f32.
    """
    # 1) im2col: patch[n, t, i*E:(i+1)*E] = x[n, t+i, :]  (4 static window copies)
    for i in range(MAX_FSZ):
        patch_ref[:, :, i * E:(i + 1) * E] = x_ref[:, i:i + TPAD, :]

    # 2) one 2-D MXU matmul for all branches/taps: (TN*TPAD, 128) @ (128, 128),
    #    bf16 operands, f32 accumulation.
    patch2d = patch_ref[...].reshape(TN * TPAD, KPACK).astype(jnp.bfloat16)
    conv2d = jnp.dot(patch2d, wpack_ref[...],
                     preferred_element_type=jnp.float32)        # (TN*TPAD, CPAD)

    # 3) mask positions invalid for a branch (window ran past L), then global
    #    max-pool over positions.  Mask/pool stay in f32.
    conv = conv2d.reshape(TN, TPAD, CPAD) + aux_ref[0:TPAD, :]  # bcast over TN
    pooled = jnp.max(conv, axis=1)                              # (TN, CPAD)

    # 4) bias + ReLU hoisted past the pool (exact: max is per-channel
    #    translation-invariant, ReLU monotone).  Dropout is identity in eval.
    pooled = jnp.maximum(pooled + aux_ref[BCONV_ROW:BCONV_ROW + 1, :], 0.0)

    # 5) linear over the (implicitly concatenated, zero-padded) features.
    out = jnp.dot(pooled.astype(jnp.bfloat16), wlin_ref[...],
                  preferred_element_type=jnp.float32)           # (TN, OPAD)
    out_ref[...] = out + aux_ref[BLIN_ROW:BLIN_ROW + 1, :]


def textcnn_forward(x, w_pack_bf16, w_lin_bf16, aux):
    """x: (N, L, E) f32 (channel dim already squeezed) -> (N, LBL) f32 logits."""
    n = x.shape[0]
    npad = ((n + TN - 1) // TN) * TN
    # host-side pad: batch -> multiple of TN (sublane aligned), seq -> LPAD
    x_pad = jnp.zeros((npad, LPAD, E), jnp.float32)
    x_pad = x_pad.at[:n, :L, :].set(x)

    out = pl.pallas_call(
        textcnn_kernel,
        out_shape=jax.ShapeDtypeStruct((npad, OPAD), jnp.float32),
        grid=(npad // TN,),
        in_specs=[
            pl.BlockSpec((TN, LPAD, E), lambda i: (i, 0, 0)),     # batch-blocked
            pl.BlockSpec((KPACK, CPAD), lambda i: (0, 0)),        # weights: same block
            pl.BlockSpec((CPAD, OPAD), lambda i: (0, 0)),         #   every step -> one DMA
            pl.BlockSpec((AUX_ROWS, CPAD), lambda i: (0, 0)),
        ],
        out_specs=pl.BlockSpec((TN, OPAD), lambda i: (i, 0)),
        scratch_shapes=[pltpu.VMEM((TN, TPAD, KPACK), jnp.float32)],
        compiler_params=pltpu.CompilerParams(
            dimension_semantics=("parallel",)),                   # megacore / v7x 2-TC sharding
    )(x_pad, w_pack_bf16, w_lin_bf16, aux)
    return out[:n, :LBL]                                          # drop batch + lane padding


def pack_params(torch_conv_ws, torch_conv_bs, torch_lin_w, torch_lin_b):
    """Host-side packing of PyTorch-shaped parameters into kernel inputs."""
    w_pack = np.zeros((KPACK, CPAD), np.float32)
    b_conv = np.zeros((CPAD,), np.float32)
    mask = np.zeros((TPAD, CPAD), np.float32)
    for k, fsz in enumerate(FSZS):
        wk = np.asarray(torch_conv_ws[k])                  # (C, 1, fsz, E) OIHW
        for i in range(fsz):
            # tap i of branch k lives at rows [i*E, (i+1)*E), cols [k*C, (k+1)*C)
            w_pack[i * E:(i + 1) * E, k * C:(k + 1) * C] = wk[:, 0, i, :].T
        b_conv[k * C:(k + 1) * C] = np.asarray(torch_conv_bs[k])
        t_valid = L - fsz + 1                              # valid conv positions
        mask[t_valid:, k * C:(k + 1) * C] = NEG            # kill invalid positions

    w_lin = np.zeros((CPAD, OPAD), np.float32)             # folded concat: rows 0..3C-1 = W.T
    w_lin[:F_TOT, :LBL] = np.asarray(torch_lin_w).T
    b_lin = np.zeros((OPAD,), np.float32)
    b_lin[:LBL] = np.asarray(torch_lin_b)

    aux = np.zeros((AUX_ROWS, CPAD), np.float32)
    aux[0:TPAD, :] = mask
    aux[BCONV_ROW, :] = b_conv
    aux[BLIN_ROW, :] = b_lin

    return (jnp.asarray(w_pack, jnp.bfloat16),             # bf16 MXU operands
            jnp.asarray(w_lin, jnp.bfloat16),
            jnp.asarray(aux, jnp.float32))                 # mask/biases stay f32


def reference_forward(x_nchw, torch_conv_ws, torch_conv_bs, torch_lin_w, torch_lin_b):
    """Pure-JAX f32 reference following the PyTorch graph (NCHW conv2d)."""
    feats = []
    for w, b in zip(torch_conv_ws, torch_conv_bs):
        y = lax.conv_general_dilated(
            x_nchw, w, window_strides=(1, 1), padding='VALID',
            dimension_numbers=('NCHW', 'OIHW', 'NCHW'))     # (N, C, T, 1)
        y = y + b.reshape(1, C, 1, 1)
        y = jnp.maximum(y, 0.0)
        y = jnp.max(y, axis=(2, 3))                          # (N, C)
        feats.append(y)
    feats = jnp.concatenate(feats, axis=1)                   # (N, 3C)
    # dropout: identity in eval
    return feats @ torch_lin_w.T + torch_lin_b               # (N, LBL)


if __name__ == "__main__":
    key = jax.random.PRNGKey(0)
    keys = jax.random.split(key, 2 * len(FSZS) + 4)

    # deterministic "parameters" in PyTorch shapes
    torch_conv_ws, torch_conv_bs = [], []
    for k, fsz in enumerate(FSZS):
        torch_conv_ws.append(
            jax.random.normal(keys[2 * k], (C, 1, fsz, E), jnp.float32) * 0.1)
        torch_conv_bs.append(
            jax.random.normal(keys[2 * k + 1], (C,), jnp.float32) * 0.1)
    torch_lin_w = jax.random.normal(keys[-4], (LBL, F_TOT), jnp.float32) * 0.1
    torch_lin_b = jax.random.normal(keys[-3], (LBL,), jnp.float32) * 0.1

    w_pack, w_lin, aux = pack_params(torch_conv_ws, torch_conv_bs,
                                     torch_lin_w, torch_lin_b)

    # --- case 1: module-consistent small batch (N=2), PyTorch layout (N,1,L,E) ---
    x_small = jax.random.normal(keys[-2], (2, 1, L, E), jnp.float32)
    out_small = jax.block_until_ready(
        textcnn_forward(x_small[:, 0, :, :], w_pack, w_lin, aux))
    ref_small = jax.block_until_ready(
        reference_forward(x_small, torch_conv_ws, torch_conv_bs,
                          torch_lin_w, torch_lin_b))
    assert out_small.shape == (2, LBL)
    np.testing.assert_allclose(np.asarray(out_small), np.asarray(ref_small),
                               rtol=2e-2, atol=2e-2)         # bf16 MXU operands

    # --- case 2: ragged batch (N=19 -> 3 grid steps) exercising the parallel
    #     batch grid, batch padding and slicing ---
    x_big = jax.random.normal(keys[-1], (19, 1, L, E), jnp.float32)
    out_big = jax.block_until_ready(
        textcnn_forward(x_big[:, 0, :, :], w_pack, w_lin, aux))
    ref_big = jax.block_until_ready(
        reference_forward(x_big, torch_conv_ws, torch_conv_bs,
                          torch_lin_w, torch_lin_b))
    assert out_big.shape == (19, LBL)
    np.testing.assert_allclose(np.asarray(out_big), np.asarray(ref_big),
                               rtol=2e-2, atol=2e-2)

    print("KERNEL_OK")
</pallas_src>

<mosaic_0001>
module attributes {stable_mosaic.version = 11 : i64} {
  func.func @textcnn_kernel(%arg0: i32, %arg1: memref<8x24x32xf32, #tpu.memory_space<vmem>>, %arg2: memref<128x128xbf16, #tpu.memory_space<vmem>>, %arg3: memref<128x128xbf16, #tpu.memory_space<vmem>>, %arg4: memref<32x128xf32, #tpu.memory_space<vmem>>, %arg5: memref<8x128xf32, #tpu.memory_space<vmem>>, %arg6: memref<8x16x128xf32, #tpu.memory_space<vmem>>) attributes {dimension_semantics = [#tpu.dimension_semantics<parallel>], iteration_bounds = array<i64: 1>, scalar_prefetch = 0 : i64, scratch_operands = 1 : i64, tpu.core_type = #tpu.core_type<tc>, window_params = [{transform_indices = @transform_0, window_bounds = array<i64: 8, 24, 32>}, {pipeline_mode = #tpu.pipeline_mode<synchronous>, transform_indices = @transform_1, window_bounds = array<i64: 128, 128>}, {pipeline_mode = #tpu.pipeline_mode<synchronous>, transform_indices = @transform_2, window_bounds = array<i64: 128, 128>}, {pipeline_mode = #tpu.pipeline_mode<synchronous>, transform_indices = @transform_3, window_bounds = array<i64: 32, 128>}, {transform_indices = @transform_4, window_bounds = array<i64: 8, 128>}]} {
    %c0 = arith.constant 0 : index
    %c0_0 = arith.constant 0 : index
    %c0_1 = arith.constant 0 : index
    %0 = vector.load %arg1[%c0, %c0_0, %c0_1] : memref<8x24x32xf32, #tpu.memory_space<vmem>>, vector<8x16x32xf32>
    %c0_2 = arith.constant 0 : index
    %c0_3 = arith.constant 0 : index
    %c0_4 = arith.constant 0 : index
    %1 = vector.load %arg6[%c0_2, %c0_3, %c0_4] : memref<8x16x128xf32, #tpu.memory_space<vmem>>, vector<8x16x32xf32>
    tpu.vector_store %arg6[%c0_2, %c0_3, %c0_4], %0 {strides = array<i32>} : memref<8x16x128xf32, #tpu.memory_space<vmem>>, vector<8x16x32xf32>,
    %c0_5 = arith.constant 0 : index
    %c1 = arith.constant 1 : index
    %c0_6 = arith.constant 0 : index
    %2 = vector.load %arg1[%c0_5, %c1, %c0_6] : memref<8x24x32xf32, #tpu.memory_space<vmem>>, vector<8x16x32xf32>
    %c0_7 = arith.constant 0 : index
    %c0_8 = arith.constant 0 : index
    %c32 = arith.constant 32 : index
    %3 = vector.load %arg6[%c0_7, %c0_8, %c32] : memref<8x16x128xf32, #tpu.memory_space<vmem>>, vector<8x16x32xf32>
    tpu.vector_store %arg6[%c0_7, %c0_8, %c32], %2 {strides = array<i32>} : memref<8x16x128xf32, #tpu.memory_space<vmem>>, vector<8x16x32xf32>,
    %c0_9 = arith.constant 0 : index
    %c2 = arith.constant 2 : index
    %c0_10 = arith.constant 0 : index
    %4 = vector.load %arg1[%c0_9, %c2, %c0_10] : memref<8x24x32xf32, #tpu.memory_space<vmem>>, vector<8x16x32xf32>
    %c0_11 = arith.constant 0 : index
    %c0_12 = arith.constant 0 : index
    %c64 = arith.constant 64 : index
    %5 = vector.load %arg6[%c0_11, %c0_12, %c64] : memref<8x16x128xf32, #tpu.memory_space<vmem>>, vector<8x16x32xf32>
    tpu.vector_store %arg6[%c0_11, %c0_12, %c64], %4 {strides = array<i32>} : memref<8x16x128xf32, #tpu.memory_space<vmem>>, vector<8x16x32xf32>,
    %c0_13 = arith.constant 0 : index
    %c3 = arith.constant 3 : index
    %c0_14 = arith.constant 0 : index
    %6 = vector.load %arg1[%c0_13, %c3, %c0_14] : memref<8x24x32xf32, #tpu.memory_space<vmem>>, vector<8x16x32xf32>
    %c0_15 = arith.constant 0 : index
    %c0_16 = arith.constant 0 : index
    %c96 = arith.constant 96 : index
    %7 = vector.load %arg6[%c0_15, %c0_16, %c96] : memref<8x16x128xf32, #tpu.memory_space<vmem>>, vector<8x16x32xf32>
    tpu.vector_store %arg6[%c0_15, %c0_16, %c96], %6 {strides = array<i32>} : memref<8x16x128xf32, #tpu.memory_space<vmem>>, vector<8x16x32xf32>,
    %c0_17 = arith.constant 0 : index
    %c0_18 = arith.constant 0 : index
    %c0_19 = arith.constant 0 : index
    %8 = vector.load %arg6[%c0_17, %c0_18, %c0_19] : memref<8x16x128xf32, #tpu.memory_space<vmem>>, vector<8x16x128xf32>
    %9 = vector.shape_cast %8 : vector<8x16x128xf32> to vector<128x128xf32>
    %10 = arith.truncf %9 : vector<128x128xf32> to vector<128x128xbf16>
    %c0_20 = arith.constant 0 : index
    %c0_21 = arith.constant 0 : index
    %11 = vector.load %arg2[%c0_20, %c0_21] : memref<128x128xbf16, #tpu.memory_space<vmem>>, vector<128x128xbf16>
    %cst = arith.constant dense<0.000000e+00> : vector<128x128xf32>
    %12 = tpu.matmul %10, %11, %cst {dimension_numbers = #tpu.dot_dimension_numbers<[1], [0], [0], [1], [0, 0, 1, 1], [], []>} : vector<128x128xbf16>, vector<128x128xbf16>, vector<128x128xf32> -> vector<128x128xf32>
    %13 = vector.shape_cast %12 : vector<128x128xf32> to vector<8x16x128xf32>
    %c0_22 = arith.constant 0 : index
    %c0_23 = arith.constant 0 : index
    %14 = vector.load %arg4[%c0_22, %c0_23] : memref<32x128xf32, #tpu.memory_space<vmem>>, vector<16x128xf32>
    %15 = vector.shape_cast %14 : vector<16x128xf32> to vector<1x16x128xf32>
    %16 = vector.broadcast %15 : vector<1x16x128xf32> to vector<8x16x128xf32>
    %17 = arith.addf %13, %16 : vector<8x16x128xf32>
    %cst_24 = arith.constant dense<0xFF800000> : vector<8x128xf32>
    %18 = vector.multi_reduction <maximumf>, %17, %cst_24 [1] : vector<8x16x128xf32> to vector<8x128xf32>
    %c16 = arith.constant 16 : index
    %c0_25 = arith.constant 0 : index
    %19 = vector.load %arg4[%c16, %c0_25] : memref<32x128xf32, #tpu.memory_space<vmem>>, vector<1x128xf32>
    %20 = vector.broadcast %19 : vector<1x128xf32> to vector<8x128xf32>
    %21 = arith.addf %18, %20 : vector<8x128xf32>
    %cst_26 = arith.constant 0.000000e+00 : f32
    %22 = vector.broadcast %cst_26 : f32 to vector<8x128xf32>
    %23 = arith.maximumf %21, %22 : vector<8x128xf32>
    %24 = arith.truncf %23 : vector<8x128xf32> to vector<8x128xbf16>
    %c0_27 = arith.constant 0 : index
    %c0_28 = arith.constant 0 : index
    %25 = vector.load %arg3[%c0_27, %c0_28] : memref<128x128xbf16, #tpu.memory_space<vmem>>, vector<128x128xbf16>
    %cst_29 = arith.constant dense<0.000000e+00> : vector<8x128xf32>
    %26 = tpu.matmul %24, %25, %cst_29 {dimension_numbers = #tpu.dot_dimension_numbers<[1], [0], [0], [1], [0, 0, 1, 1], [], []>} : vector<8x128xbf16>, vector<128x128xbf16>, vector<8x128xf32> -> vector<8x128xf32>
    %c24 = arith.constant 24 : index
    %c0_30 = arith.constant 0 : index
    %27 = vector.load %arg4[%c24, %c0_30] : memref<32x128xf32, #tpu.memory_space<vmem>>, vector<1x128xf32>
    %28 = vector.broadcast %27 : vector<1x128xf32> to vector<8x128xf32>
    %29 = arith.addf %26, %28 : vector<8x128xf32>
    %c0_31 = arith.constant 0 : index
    %c0_32 = arith.constant 0 : index
    %30 = vector.load %arg5[%c0_31, %c0_32] : memref<8x128xf32, #tpu.memory_space<vmem>>, vector<8x128xf32>
    tpu.vector_store %arg5[%c0_31, %c0_32], %29 {strides = array<i32>} : memref<8x128xf32, #tpu.memory_space<vmem>>, vector<8x128xf32>,
    return
  }
  func.func @transform_0(%arg0: i32) -> (i32, i32, i32) {
    %c0_i32 = arith.constant 0 : i32
    %c0_i32_0 = arith.constant 0 : i32
    %c0_i32_1 = arith.constant 0 : i32
    return %arg0, %c0_i32, %c0_i32_0 : i32, i32, i32
  }
  func.func @transform_1(%arg0: i32) -> (i32, i32) {
    %c0_i32 = arith.constant 0 : i32
    %c0_i32_0 = arith.constant 0 : i32
    %c0_i32_1 = arith.constant 0 : i32
    return %c0_i32, %c0_i32_0 : i32, i32
  }
  func.func @transform_2(%arg0: i32) -> (i32, i32) {
    %c0_i32 = arith.constant 0 : i32
    %c0_i32_0 = arith.constant 0 : i32
    %c0_i32_1 = arith.constant 0 : i32
    return %c0_i32, %c0_i32_0 : i32, i32
  }
  func.func @transform_3(%arg0: i32) -> (i32, i32) {
    %c0_i32 = arith.constant 0 : i32
    %c0_i32_0 = arith.constant 0 : i32
    %c0_i32_1 = arith.constant 0 : i32
    return %c0_i32, %c0_i32_0 : i32, i32
  }
  func.func @transform_4(%arg0: i32) -> (i32, i32) {
    %c0_i32 = arith.constant 0 : i32
    %c0_i32_0 = arith.constant 0 : i32
    return %arg0, %c0_i32 : i32, i32
  }
}

</mosaic_0001>

<bundles_post_ra>
// kernel: tpu_custom_call.1
= control target key start
LH: loop header
LB: loop body
LE: loop exit
PB: predicated region body
PF: predicated region fallthrough
CT: control target
= control target key end

     0   :  { %9 = vsyncpa [#allocation4], 0  ;;  %s1275_s0 = inlined_call_operand.hbm [shape: f32[8,24,32], index: 0, kind: input, shape index: {}]   ;;  %s1276_s1 = inlined_call_operand.hbm [shape: bf16[128,128], index: 1, kind: input, shape index: {}]   ;;  %s1277_s2 = inlined_call_operand.hbm [shape: bf16[128,128], index: 2, kind: input, shape index: {}]   ;;  %s1278_s3 = inlined_call_operand.hbm [shape: f32[32,128], index: 3, kind: input, shape index: {}]   ;;  %s1279_s4 = inlined_call_operand.hbm [shape: f32[8,128], index: 4, kind: output, shape index: {}]  }
   0x1   :  { %10 = vsyncpa [#allocation7], 0 }
   0x2   :  { %11 = vsyncpa [#allocation10], 0 }
   0x3   :  { %12 = vsyncpa [#allocation5], 0  ;;  %s1084_s15 = smov [#allocation6]  }
   0x4   :  { %s30_s16 = sshll.u32 %s1084_s15, 4  ;;  %s31_s16 = int_to_ptr.vmem [resolvable:$true] %s30_s16 }
   0x5   :  { %s984_s17 = scalar_lea.vmem %s31_s16, 1024  ;;  %p989_p1 = scmp.lt.s32.totalorder %s31_s16, %s31_s16 }
   0x6   :  { %p985_p0 = scmp.ne.s32.totalorder %s31_s16, %s984_s17  ;;  %p990_p2 = scmp.lt.s32.totalorder %s984_s17, %s984_s17 }
   0x8   :  { %p991_p3 = por %p990_p2, %p989_p1 }
   0xa   :  { %p992_p4 = pnand %p991_p3, %p985_p0 }
   0xc   :  { %995 = shalt.err (!%p992_p4)
}
   0xd   :  { %s1085_s18 = smov 64   ;;  %s1086_s19 = smov 4  }
   0xe   :  { %36 = dma.hbm_to_vmem [thread:$0]  %s1276_s1, 1024, %s31_s16, [#allocation7], %s1085_s18, %s1085_s18, %s1086_s19  }
   0xf   :  { %s1087_s22 = smov [#allocation3]  }
  0x10   :  { %s18_s23 = sshll.u32 %s1087_s22, 4  ;;  %s19_s23 = int_to_ptr.vmem [resolvable:$true] %s18_s23 }
  0x11   :  { %s1004_s24 = scalar_lea.vmem %s19_s23, 3072  ;;  %p1009_p6 = scmp.lt.s32.totalorder %s19_s23, %s19_s23 }
  0x12   :  { %p1005_p5 = scmp.ne.s32.totalorder %s19_s23, %s1004_s24  ;;  %p1010_p7 = scmp.lt.s32.totalorder %s1004_s24, %s1004_s24 }
  0x14   :  { %p1011_p8 = por %p1010_p7, %p1009_p6 }
  0x16   :  { %p1012_p9 = pnand %p1011_p8, %p1005_p5 }
  0x18   :  { %1015 = shalt.err (!%p1012_p9)
}
  0x19   :  { %s1088_s25 = smov 128   ;;  %s1089_s26 = smov 8  }
  0x1a   :  { %24 = dma.hbm_to_vmem [thread:$0]  %s1275_s0, 3072, %s19_s23, [#allocation4], %s1088_s25, %s1088_s25, %s1089_s26  }
  0x1b   :  { %s1090_s29 = smov [#allocation8]   ;;  %s1091_s5 = smov [#allocation9]  }
  0x1c   :  { %s42_s30 = sshll.u32 %s1090_s29, 4  ;;  %s54_s1 = sshll.u32 %s1091_s5, 4  ;;  %s43_s30 = int_to_ptr.vmem [resolvable:$true] %s42_s30  ;;  %s55_s1 = int_to_ptr.vmem [resolvable:$true] %s54_s1 }
  0x1d   :  { %s1024_s6 = scalar_lea.vmem %s43_s30, 1024  ;;  %p1029_p11 = scmp.lt.s32.totalorder %s43_s30, %s43_s30 }
  0x1e   :  { %p1025_p10 = scmp.ne.s32.totalorder %s43_s30, %s1024_s6  ;;  %p1030_p12 = scmp.lt.s32.totalorder %s1024_s6, %s1024_s6 }
  0x20   :  { %p1031_p13 = por %p1030_p12, %p1029_p11 }
  0x22   :  { %p1032_p0 = pnand %p1031_p13, %p1025_p10 }
  0x24   :  { %1035 = shalt.err (!%p1032_p0)
}
  0x25   :  { %48 = dma.hbm_to_vmem [thread:$0]  %s1277_s2, 1024, %s43_s30, [#allocation7], %s1085_s18, %s1085_s18, %s1086_s19  }
  0x26   :  { %s1044_s0 = scalar_lea.vmem %s55_s1, 512  ;;  %p1049_p2 = scmp.lt.s32.totalorder %s55_s1, %s55_s1 }
  0x27   :  { %p1045_p1 = scmp.ne.s32.totalorder %s55_s1, %s1044_s0  ;;  %p1050_p3 = scmp.lt.s32.totalorder %s1044_s0, %s1044_s0 }
  0x29   :  { %p1051_p4 = por %p1050_p3, %p1049_p2 }
  0x2b   :  { %p1052_p5 = pnand %p1051_p4, %p1045_p1 }
  0x2d   :  { %1055 = shalt.err (!%p1052_p5)
}
  0x2e   :  { %60 = dma.hbm_to_vmem [thread:$0]  %s1278_s3, 512, %s55_s1, [#allocation10], %s1088_s25, %s1088_s25, %s1089_s26  }
  0x2f   :  { %1076 = dma.done.wait [#allocation4], 3072  }
  0x30   :  { %1077 = vsyncadd [#allocation4], 4294964224 }
  0x31   :  { %1078 = dma.done.wait [#allocation7], 2048  }
  0x32   :  { %1079 = vsyncadd [#allocation7], 4294965248 }
  0x33   :  { %1080 = dma.done.wait [#allocation10], 512  }
  0x34   :  { %1081 = vsyncadd [#allocation10], 4294966784  ;;  %v109_v0 = vld [vmem:[#allocation3 + $0x19] sm:$0xff]  ;;  %v107_v1 = vld [vmem:[#allocation3 + $0x1] sm:$0xff]  ;;  %s1092_s2 = smov 32   ;;  %vm90_vm0 = vcmask 261120  }
  0x35   :  { %143 = vrot.lane.b32.xlu1 %v109_v0, %s1092_s2  ;;  %139 = vrot.lane.b32.xlu0 %v107_v1, %s1092_s2  ;;  %v110_v2 = vld [vmem:[#allocation3 + $0x21] sm:$0xff]  ;;  %v108_v3 = vld [vmem:[#allocation3 + $0x9] sm:$0xff]  ;;  %v960_v12 = vld [vmem:[#allocation6 + $0x38] sm:$0xff]   ;;  %s1093_s3 = smov 96   ;;  %vm187_vm1 = vcmask 523520   ;;  %vm284_vm2 = vcmask 785920  }
  0x36   :  { %v205_v4 = vld [vmem:[#allocation3 + $0xa] sm:$0xff]  ;;  %v204_v5 = vld [vmem:[#allocation3 + $0x2] sm:$0xff]  ;;  %v206_v7 = vld [vmem:[#allocation3 + $0x1a] sm:$0xff]  ;;  %895 = vmatprep.subr.bf16.mxu0 %v960_v12  ;;  %vm381_vm3 = vcmask 1048320   ;;  %vm1095_vm4 = vmmov 0   ;;  %vm724_vm5 = vcmask 1041409  }
  0x37   :  { %v207_v6 = vld [vmem:[#allocation3 + $0x22] sm:$0xff]  ;;  %v302_v8 = vld [vmem:[#allocation3 + $0xb] sm:$0xff]  ;;  %v76_v13 = vld [vmem:[#allocation3 + $0x18] sm:$0xff]  ;;  %896 = vmatpush3.bf16.msra.mxu0 %v960_v12  ;;  %vm727_vm6 = vcmask 1042434   ;;  %vm730_vm7 = vcmask 1043459   ;;  %vm733_vm8 = vcmask 1044484  }
  0x38   :  { %v301_v9 = vld [vmem:[#allocation3 + $0x3] sm:$0xff]  ;;  %v303_v11 = vld [vmem:[#allocation3 + $0x1b] sm:$0xff]  ;;  %93 = vst.msk [vmem:[#allocation2 + $0x10] sm:$0xff] %vm90_vm0, %v76_v13  ;;  %v961_v15 = vld [vmem:[#allocation6 + $0x30] sm:$0xff]   ;;  %vm736_vm9 = vcmask 1045509   ;;  %vm739_vm10 = vcmask 1046534  }
  0x39   :  { %145 = vrot.lane.b32.xlu1 %v110_v2, %s1092_s2  ;;  %141 = vrot.lane.b32.xlu0 %v108_v3, %s1092_s2  ;;  %v304_v10 = vld [vmem:[#allocation3 + $0x23] sm:$0xff]  ;;  %v112_v19 = vld [vmem:[#allocation3 + $0x39] sm:$0xff]  ;;  %v111_v20 = vld [vmem:[#allocation3 + $0x31] sm:$0xff]  ;;  %vm742_vm11 = vcmask 1047559   ;;  %s1096_s11 = smov [#allocation11]  }
  0x3a   :  { %v74_v14 = vld [vmem:[#allocation3] sm:$0xff]  ;;  %v75_v17 = vld [vmem:[#allocation3 + $0x8] sm:$0xff]  ;;  %897 = vmatprep.subr.bf16.mxu0 %v961_v15  ;;  %v114_v21 = vld [vmem:[#allocation3 + $0x51] sm:$0xff]  ;;  %s841_s12 = sshll.u32 %s1096_s11, 4  ;;  %s842_s12 = int_to_ptr.vmem [resolvable:$true] %s841_s12 }
  0x3b   :  { %91 = vst.msk [vmem:[#allocation2] sm:$0xff] %vm90_vm0, %v74_v14  ;;  %v77_v16 = vld [vmem:[#allocation3 + $0x20] sm:$0xff]  ;;  %92 = vst.msk [vmem:[#allocation2 + $0x8] sm:$0xff] %vm90_vm0, %v75_v17  ;;  %v962_v18 = vld [vmem:[#allocation6 + $0x28] sm:$0xff]   ;;  %898 = vmatpush3.bf16.msra.mxu0 %v961_v15  ;;  %s1056_s13 = scalar_lea.vmem %s842_s12, 128  ;;  %p1061_p7 = scmp.lt.s32.totalorder %s842_s12, %s842_s12 }
  0x3c   :  { %94 = vst.msk [vmem:[#allocation2 + $0x18] sm:$0xff] %vm90_vm0, %v77_v16  ;;  %899 = vmatprep.subr.bf16.mxu0 %v962_v18  ;;  %v963_v22 = vld [vmem:[#allocation6 + $0x20] sm:$0xff]   ;;  %v79_v23 = vld [vmem:[#allocation3 + $0x38] sm:$0xff]  ;;  %v78_v24 = vld [vmem:[#allocation3 + $0x30] sm:$0xff]  ;;  %p1057_p6 = scmp.ne.s32.totalorder %s842_s12, %s1056_s13  ;;  %p1062_p8 = scmp.lt.s32.totalorder %s1056_s13, %s1056_s13 }
  0x3d   :  { %238 = vrot.lane.b32.xlu1 %v205_v4, %s1085_s18  ;;  %236 = vrot.lane.b32.xlu0 %v204_v5, %s1085_s18  ;;  %v113_v25 = vld [vmem:[#allocation3 + $0x49] sm:$0xff]  ;;  %96 = vst.msk [vmem:[#allocation2 + $0x28] sm:$0xff] %vm90_vm0, %v79_v23  ;;  %95 = vst.msk [vmem:[#allocation2 + $0x20] sm:$0xff] %vm90_vm0, %v78_v24  ;;  %v964_v26 = vld [vmem:[#allocation6 + $0x18] sm:$0xff]  }
  0x3e   :  { %v81_v27 = vld [vmem:[#allocation3 + $0x50] sm:$0xff]  ;;  %v80_v28 = vld [vmem:[#allocation3 + $0x48] sm:$0xff]  ;;  %v209_v29 = vld [vmem:[#allocation3 + $0x3a] sm:$0xff]  ;;  %p1063_p9 = por %p1062_p8, %p1061_p7 }
  0x3f   :  { %900 = vmatpush3.bf16.msra.mxu0 %v962_v18  ;;  %98 = vst.msk [vmem:[#allocation2 + $0x38] sm:$0xff] %vm90_vm0, %v81_v27  ;;  %97 = vst.msk [vmem:[#allocation2 + $0x30] sm:$0xff] %vm90_vm0, %v80_v28  ;;  %v208_v30 = vld [vmem:[#allocation3 + $0x32] sm:$0xff]  ;;  %v210_v33 = vld [vmem:[#allocation3 + $0x4a] sm:$0xff] }
  0x40   :  { %901 = vmatprep.subr.bf16.mxu0 %v963_v22  ;;  %v965_v31 = vld [vmem:[#allocation6 + $0x10] sm:$0xff]   ;;  %v83_v34 = vld [vmem:[#allocation3 + $0x68] sm:$0xff]  ;;  %v82_v35 = vld [vmem:[#allocation3 + $0x60] sm:$0xff]  ;;  %p1064_p10 = pnand %p1063_p9, %p1057_p6 }
  0x41   :  { %242 = vrot.lane.b32.xlu1 %v207_v6, %s1085_s18  ;;  %240 = vrot.lane.b32.xlu0 %v206_v7, %s1085_s18  ;;  %v211_v32 = vld [vmem:[#allocation3 + $0x52] sm:$0xff]  ;;  %100 = vst.msk [vmem:[#allocation2 + $0x48] sm:$0xff] %vm90_vm0, %v83_v34  ;;  %99 = vst.msk [vmem:[#allocation2 + $0x40] sm:$0xff] %vm90_vm0, %v82_v35  ;;  %v966_v36 = vld [vmem:[#allocation6 + $0x8] sm:$0xff]  }
  0x42   :  { %v306_v37 = vld [vmem:[#allocation3 + $0x3b] sm:$0xff]  ;;  %v305_v38 = vld [vmem:[#allocation3 + $0x33] sm:$0xff]  ;;  %v307_v43 = vld [vmem:[#allocation3 + $0x4b] sm:$0xff] }
  0x43   :  { %902 = vmatpush3.bf16.msra.mxu0 %v963_v22  ;;  %v85_v39 = vld [vmem:[#allocation3 + $0x80] sm:$0xff]  ;;  %v84_v40 = vld [vmem:[#allocation3 + $0x78] sm:$0xff]  ;;  %v116_v44 = vld [vmem:[#allocation3 + $0x69] sm:$0xff] }
  0x44   :  { %903 = vmatprep.subr.bf16.mxu0 %v964_v26  ;;  %102 = vst.msk [vmem:[#allocation2 + $0x58] sm:$0xff] %vm90_vm0, %v85_v39  ;;  %101 = vst.msk [vmem:[#allocation2 + $0x50] sm:$0xff] %vm90_vm0, %v84_v40  ;;  %v967_v41 = vld [vmem:[#allocation6] sm:$0xff]   ;;  %v308_v42 = vld [vmem:[#allocation3 + $0x53] sm:$0xff] }
  0x45   :  { %335 = vrot.lane.b32.xlu1 %v302_v8, %s1093_s3  ;;  %333 = vrot.lane.b32.xlu0 %v301_v9, %s1093_s3  ;;  %v115_v45 = vld [vmem:[#allocation3 + $0x61] sm:$0xff]  ;;  %v117_v47 = vld [vmem:[#allocation3 + $0x79] sm:$0xff]  ;;  %v213_v48 = vld [vmem:[#allocation3 + $0x6a] sm:$0xff] }
  0x46   :  { %v118_v46 = vld [vmem:[#allocation3 + $0x81] sm:$0xff]  ;;  %v87_v52 = vld [vmem:[#allocation3 + $0x98] sm:$0xff]  ;;  %v86_v53 = vld [vmem:[#allocation3 + $0x90] sm:$0xff] }
  0x47   :  { %904 = vmatpush3.bf16.msra.mxu0 %v964_v26  ;;  %v212_v49 = vld [vmem:[#allocation3 + $0x62] sm:$0xff]  ;;  %v214_v51 = vld [vmem:[#allocation3 + $0x7a] sm:$0xff]  ;;  %104 = vst.msk [vmem:[#allocation2 + $0x68] sm:$0xff] %vm90_vm0, %v87_v52  ;;  %103 = vst.msk [vmem:[#allocation2 + $0x60] sm:$0xff] %vm90_vm0, %v86_v53 }
  0x48   :  { %905 = vmatprep.subr.bf16.mxu0 %v965_v31  ;;  %v215_v50 = vld [vmem:[#allocation3 + $0x82] sm:$0xff]  ;;  %v310_v54 = vld [vmem:[#allocation3 + $0x6b] sm:$0xff]  ;;  %v120_v60 = vld [vmem:[#allocation3 + $0x99] sm:$0xff] }
  0x49   :  { %339 = vrot.lane.b32.xlu1 %v304_v10, %s1093_s3  ;;  %337 = vrot.lane.b32.xlu0 %v303_v11, %s1093_s3  ;;  %v309_v55 = vld [vmem:[#allocation3 + $0x63] sm:$0xff]  ;;  %v89_v56 = vld [vmem:[#allocation3 + $0xb0] sm:$0xff]  ;;  %v311_v59 = vld [vmem:[#allocation3 + $0x7b] sm:$0xff] }
  0x4a   :  { %v88_v57 = vld [vmem:[#allocation3 + $0xa8] sm:$0xff]  ;;  %106 = vst.msk [vmem:[#allocation2 + $0x78] sm:$0xff] %vm90_vm0, %v89_v56  ;;  %v119_v61 = vld [vmem:[#allocation3 + $0x91] sm:$0xff]  ;;  %v217_v0 = vld [vmem:[#allocation3 + $0x9a] sm:$0xff] }
  0x4b   :  { %906 = vmatpush3.bf16.msra.mxu0 %v965_v31  ;;  %105 = vst.msk [vmem:[#allocation2 + $0x70] sm:$0xff] %vm90_vm0, %v88_v57  ;;  %v312_v58 = vld [vmem:[#allocation3 + $0x83] sm:$0xff]  ;;  %v122_v62 = vld [vmem:[#allocation3 + $0xb1] sm:$0xff]  ;;  %v314_v4 = vld [vmem:[#allocation3 + $0x9b] sm:$0xff] }
  0x4c   :  { %907 = vmatprep.subr.bf16.mxu0 %v966_v36  ;;  %v121_v63 = vld [vmem:[#allocation3 + $0xa9] sm:$0xff]  ;;  %v216_v1 = vld [vmem:[#allocation3 + $0x92] sm:$0xff] }
  0x4d   :  { %149 = vrot.lane.b32.xlu1 %v112_v19, %s1092_s2  ;;  %147 = vrot.lane.b32.xlu0 %v111_v20, %s1092_s2  ;;  %v219_v2 = vld [vmem:[#allocation3 + $0xb2] sm:$0xff]  ;;  %v218_v3 = vld [vmem:[#allocation3 + $0xaa] sm:$0xff] }
  0x4e   :  { %v313_v5 = vld [vmem:[#allocation3 + $0x93] sm:$0xff]  ;;  %v315_v7 = vld [vmem:[#allocation3 + $0xab] sm:$0xff] }
  0x4f   :  { %908 = vmatpush3.bf16.msra.mxu0 %v966_v36  ;;  %v316_v6 = vld [vmem:[#allocation3 + $0xb3] sm:$0xff] }
  0x50   :  { %909 = vmatprep.subr.bf16.mxu0 %v967_v41 }
  0x51   :  { %153 = vrot.lane.b32.xlu1 %v114_v21, %s1092_s2  ;;  %151 = vrot.lane.b32.xlu0 %v113_v25, %s1092_s2 }
  0x53   :  { %910 = vmatpush3.bf16.msra.mxu0 %v967_v41 }
  0x55   :  { %246 = vrot.lane.b32.xlu1 %v209_v29, %s1085_s18  ;;  %244 = vrot.lane.b32.xlu0 %v208_v30, %s1085_s18 }
  0x59   :  { %250 = vrot.lane.b32.xlu1 %v211_v32, %s1085_s18  ;;  %248 = vrot.lane.b32.xlu0 %v210_v33, %s1085_s18 }
  0x5d   :  { %343 = vrot.lane.b32.xlu1 %v306_v37, %s1093_s3  ;;  %341 = vrot.lane.b32.xlu0 %v305_v38, %s1093_s3 }
  0x61   :  { %347 = vrot.lane.b32.xlu1 %v308_v42, %s1093_s3  ;;  %345 = vrot.lane.b32.xlu0 %v307_v43, %s1093_s3 }
  0x65   :  { %157 = vrot.lane.b32.xlu1 %v116_v44, %s1092_s2  ;;  %155 = vrot.lane.b32.xlu0 %v115_v45, %s1092_s2 }
  0x69   :  { %161 = vrot.lane.b32.xlu1 %v118_v46, %s1092_s2  ;;  %159 = vrot.lane.b32.xlu0 %v117_v47, %s1092_s2 }
  0x6d   :  { %254 = vrot.lane.b32.xlu1 %v213_v48, %s1085_s18  ;;  %252 = vrot.lane.b32.xlu0 %v212_v49, %s1085_s18 }
  0x71   :  { %258 = vrot.lane.b32.xlu1 %v215_v50, %s1085_s18  ;;  %256 = vrot.lane.b32.xlu0 %v214_v51, %s1085_s18 }
  0x75   :  { %351 = vrot.lane.b32.xlu1 %v310_v54, %s1093_s3  ;;  %349 = vrot.lane.b32.xlu0 %v309_v55, %s1093_s3 }
  0x79   :  { %355 = vrot.lane.b32.xlu1 %v312_v58, %s1093_s3  ;;  %353 = vrot.lane.b32.xlu0 %v311_v59, %s1093_s3 }
  0x7d   :  { %165 = vrot.lane.b32.xlu1 %v120_v60, %s1092_s2  ;;  %163 = vrot.lane.b32.xlu0 %v119_v61, %s1092_s2 }
  0x81   :  { %169 = vrot.lane.b32.xlu1 %v122_v62, %s1092_s2  ;;  %167 = vrot.lane.b32.xlu0 %v121_v63, %s1092_s2 }
  0x85   :  { %262 = vrot.lane.b32.xlu1 %v217_v0, %s1085_s18  ;;  %260 = vrot.lane.b32.xlu0 %v216_v1, %s1085_s18 }
  0x89   :  { %266 = vrot.lane.b32.xlu1 %v219_v2, %s1085_s18  ;;  %264 = vrot.lane.b32.xlu0 %v218_v3, %s1085_s18 }
  0x8d   :  { %359 = vrot.lane.b32.xlu1 %v314_v4, %s1093_s3  ;;  %357 = vrot.lane.b32.xlu0 %v313_v5, %s1093_s3 }
  0x91   :  { %363 = vrot.lane.b32.xlu1 %v316_v6, %s1093_s3  ;;  %361 = vrot.lane.b32.xlu0 %v315_v7, %s1093_s3 }
  0xa7   :  { %v144_v8 = vpop.permute.xlu1 %143  ;;  %v140_v9 = vpop.permute.xlu0 %139 }
  0xa8   :  { %190 = vst.msk [vmem:[#allocation2 + $0x10] sm:$0xff] %vm187_vm1, %v144_v8  ;;  %188 = vst.msk [vmem:[#allocation2] sm:$0xff] %vm187_vm1, %v140_v9 }
  0xab   :  { %v146_v10 = vpop.permute.xlu1 %145  ;;  %v142_v11 = vpop.permute.xlu0 %141 }
  0xac   :  { %191 = vst.msk [vmem:[#allocation2 + $0x18] sm:$0xff] %vm187_vm1, %v146_v10  ;;  %189 = vst.msk [vmem:[#allocation2 + $0x8] sm:$0xff] %vm187_vm1, %v142_v11 }
  0xaf   :  { %v239_v12 = vpop.permute.xlu1 %238  ;;  %v237_v13 = vpop.permute.xlu0 %236 }
  0xb0   :  { %286 = vst.msk [vmem:[#allocation2 + $0x8] sm:$0xff] %vm284_vm2, %v239_v12  ;;  %285 = vst.msk [vmem:[#allocation2] sm:$0xff] %vm284_vm2, %v237_v13 }
  0xb3   :  { %v243_v14 = vpop.permute.xlu1 %242  ;;  %v241_v15 = vpop.permute.xlu0 %240 }
  0xb4   :  { %288 = vst.msk [vmem:[#allocation2 + $0x18] sm:$0xff] %vm284_vm2, %v243_v14  ;;  %287 = vst.msk [vmem:[#allocation2 + $0x10] sm:$0xff] %vm284_vm2, %v241_v15 }
  0xb7   :  { %v336_v16 = vpop.permute.xlu1 %335  ;;  %v334_v17 = vpop.permute.xlu0 %333 }
  0xb8   :  { %383 = vst.msk [vmem:[#allocation2 + $0x8] sm:$0xff] %vm381_vm3, %v336_v16  ;;  %382 = vst.msk [vmem:[#allocation2] sm:$0xff] %vm381_vm3, %v334_v17  ;;  %v968_v16 = vld [vmem:[#allocation8 + $0x38] sm:$0xff]   ;;  %v1094_v17 = vmov 0.0  }
  0xb9   :  { %927 = vmatprep.subr.bf16.mxu1 %v1094_v17  ;;  %943 = vmatprep.mubr.msk.bf16.mxu1 %vm1095_vm4, %v1094_v17 }
  0xba   :  { %928 = vmatpush3.bf16.msra.mxu1 %v968_v16 }
  0xbb   :  { %v340_v18 = vpop.permute.xlu1 %339  ;;  %v338_v19 = vpop.permute.xlu0 %337  ;;  %929 = vmatprep.subr.bf16.mxu1 %v1094_v17 }
  0xbc   :  { %385 = vst.msk [vmem:[#allocation2 + $0x18] sm:$0xff] %vm381_vm3, %v340_v18  ;;  %384 = vst.msk [vmem:[#allocation2 + $0x10] sm:$0xff] %vm381_vm3, %v338_v19  ;;  %v969_v18 = vld [vmem:[#allocation8 + $0x30] sm:$0xff]   ;;  %v970_v19 = vld [vmem:[#allocation8 + $0x28] sm:$0xff]  }
  0xbe   :  { %930 = vmatpush3.bf16.msra.mxu1 %v969_v18 }
  0xbf   :  { %v150_v20 = vpop.permute.xlu1 %149  ;;  %v148_v21 = vpop.permute.xlu0 %147  ;;  %v398_v22 = vld [vmem:[#allocation2] sm:$0xff]  ;;  %v399_v23 = vld [vmem:[#allocation2 + $0x8] sm:$0xff]  ;;  %931 = vmatprep.subr.bf16.mxu1 %v1094_v17 }
  0xc0   :  { %193 = vst.msk [vmem:[#allocation2 + $0x28] sm:$0xff] %vm187_vm1, %v150_v20  ;;  %192 = vst.msk [vmem:[#allocation2 + $0x20] sm:$0xff] %vm187_vm1, %v148_v21  ;;  %v414_v24 = vpack.c.bf16 %v399_v23, %v398_v22  ;;  %v971_v20 = vld [vmem:[#allocation8 + $0x20] sm:$0xff]   ;;  %v972_v21 = vld [vmem:[#allocation8 + $0x18] sm:$0xff]  }
  0xc1   :  { %v973_v22 = vld [vmem:[#allocation8 + $0x10] sm:$0xff]   ;;  %v974_v23 = vld [vmem:[#allocation8 + $0x8] sm:$0xff]  }
  0xc2   :  { %911 = vmatprep.mubr.bf16.mxu0 %v414_v24  ;;  %932 = vmatpush3.bf16.msra.mxu1 %v970_v19  ;;  %v975_v24 = vld [vmem:[#allocation8] sm:$0xff]  }
  0xc3   :  { %v154_v25 = vpop.permute.xlu1 %153  ;;  %v152_v26 = vpop.permute.xlu0 %151  ;;  %v400_v27 = vld [vmem:[#allocation2 + $0x10] sm:$0xff]  ;;  %v401_v28 = vld [vmem:[#allocation2 + $0x18] sm:$0xff]  ;;  %933 = vmatprep.subr.bf16.mxu1 %v1094_v17 }
  0xc4   :  { %195 = vst.msk [vmem:[#allocation2 + $0x38] sm:$0xff] %vm187_vm1, %v154_v25  ;;  %194 = vst.msk [vmem:[#allocation2 + $0x30] sm:$0xff] %vm187_vm1, %v152_v26  ;;  %v415_v29 = vpack.c.bf16 %v401_v28, %v400_v27 }
  0xc6   :  { %912 = vmatmul.mubr.bf16.vlgmr.msra.gmra.mxu0 %v415_v29  ;;  %934 = vmatpush3.bf16.msra.mxu1 %v971_v20 }
  0xc7   :  { %v247_v30 = vpop.permute.xlu1 %246  ;;  %v245_v31 = vpop.permute.xlu0 %244  ;;  %935 = vmatprep.subr.bf16.mxu1 %v1094_v17 }
  0xc8   :  { %290 = vst.msk [vmem:[#allocation2 + $0x28] sm:$0xff] %vm284_vm2, %v247_v30  ;;  %289 = vst.msk [vmem:[#allocation2 + $0x20] sm:$0xff] %vm284_vm2, %v245_v31 }
  0xca   :  { %936 = vmatpush3.bf16.msra.mxu1 %v972_v21  ;;  %v860_v21 = vld [vmem:[#allocation9 + $0x10] ss:$0 sm:$0xff] }
  0xcb   :  { %v251_v32 = vpop.permute.xlu1 %250  ;;  %v249_v33 = vpop.permute.xlu0 %248  ;;  %937 = vmatprep.subr.bf16.mxu1 %v1094_v17 }
  0xcc   :  { %292 = vst.msk [vmem:[#allocation2 + $0x38] sm:$0xff] %vm284_vm2, %v251_v32  ;;  %291 = vst.msk [vmem:[#allocation2 + $0x30] sm:$0xff] %vm284_vm2, %v249_v33  ;;  %v1252_v32 = vld [vmem:[#allocation9 + $0x8] sm:$0xff] }
  0xce   :  { %938 = vmatpush3.bf16.msra.mxu1 %v973_v22 }
  0xcf   :  { %v344_v34 = vpop.permute.xlu1 %343  ;;  %v342_v35 = vpop.permute.xlu0 %341  ;;  %939 = vmatprep.subr.bf16.mxu1 %v1094_v17 }
  0xd0   :  { %387 = vst.msk [vmem:[#allocation2 + $0x28] sm:$0xff] %vm381_vm3, %v344_v34  ;;  %386 = vst.msk [vmem:[#allocation2 + $0x20] sm:$0xff] %vm381_vm3, %v342_v35  ;;  %v1254_v34 = vld [vmem:[#allocation9] sm:$0xff] }
  0xd2   :  { %940 = vmatpush3.bf16.msra.mxu1 %v974_v23 }
  0xd3   :  { %v348_v36 = vpop.permute.xlu1 %347  ;;  %v346_v37 = vpop.permute.xlu0 %345  ;;  %941 = vmatprep.subr.bf16.mxu1 %v1094_v17 }
  0xd4   :  { %389 = vst.msk [vmem:[#allocation2 + $0x38] sm:$0xff] %vm381_vm3, %v348_v36  ;;  %388 = vst.msk [vmem:[#allocation2 + $0x30] sm:$0xff] %vm381_vm3, %v346_v37 }
  0xd6   :  { %942 = vmatpush3.bf16.msra.mxu1 %v975_v24 }
  0xd7   :  { %v158_v38 = vpop.permute.xlu1 %157  ;;  %v156_v39 = vpop.permute.xlu0 %155  ;;  %v402_v40 = vld [vmem:[#allocation2 + $0x20] sm:$0xff]  ;;  %v403_v41 = vld [vmem:[#allocation2 + $0x28] sm:$0xff] }
  0xd8   :  { %197 = vst.msk [vmem:[#allocation2 + $0x48] sm:$0xff] %vm187_vm1, %v158_v38  ;;  %196 = vst.msk [vmem:[#allocation2 + $0x40] sm:$0xff] %vm187_vm1, %v156_v39  ;;  %v416_v42 = vpack.c.bf16 %v403_v41, %v402_v40 }
  0xda   :  { %915 = vmatprep.mubr.bf16.mxu0 %v416_v42 }
  0xdb   :  { %v162_v43 = vpop.permute.xlu1 %161  ;;  %v160_v44 = vpop.permute.xlu0 %159  ;;  %v404_v45 = vld [vmem:[#allocation2 + $0x30] sm:$0xff]  ;;  %v405_v46 = vld [vmem:[#allocation2 + $0x38] sm:$0xff] }
  0xdc   :  { %199 = vst.msk [vmem:[#allocation2 + $0x58] sm:$0xff] %vm187_vm1, %v162_v43  ;;  %198 = vst.msk [vmem:[#allocation2 + $0x50] sm:$0xff] %vm187_vm1, %v160_v44  ;;  %v417_v47 = vpack.c.bf16 %v405_v46, %v404_v45 }
  0xde   :  { %916 = vmatmul.mubr.bf16.gmra.mxu0 %v417_v47 }
  0xdf   :  { %v255_v48 = vpop.permute.xlu1 %254  ;;  %v253_v49 = vpop.permute.xlu0 %252 }
  0xe0   :  { %294 = vst.msk [vmem:[#allocation2 + $0x48] sm:$0xff] %vm284_vm2, %v255_v48  ;;  %293 = vst.msk [vmem:[#allocation2 + $0x40] sm:$0xff] %vm284_vm2, %v253_v49 }
  0xe3   :  { %v259_v50 = vpop.permute.xlu1 %258  ;;  %v257_v51 = vpop.permute.xlu0 %256 }
  0xe4   :  { %296 = vst.msk [vmem:[#allocation2 + $0x58] sm:$0xff] %vm284_vm2, %v259_v50  ;;  %295 = vst.msk [vmem:[#allocation2 + $0x50] sm:$0xff] %vm284_vm2, %v257_v51 }
  0xe7   :  { %v352_v52 = vpop.permute.xlu1 %351  ;;  %v350_v53 = vpop.permute.xlu0 %349 }
  0xe8   :  { %391 = vst.msk [vmem:[#allocation2 + $0x48] sm:$0xff] %vm381_vm3, %v352_v52  ;;  %390 = vst.msk [vmem:[#allocation2 + $0x40] sm:$0xff] %vm381_vm3, %v350_v53 }
  0xeb   :  { %v356_v54 = vpop.permute.xlu1 %355  ;;  %v354_v55 = vpop.permute.xlu0 %353 }
  0xec   :  { %393 = vst.msk [vmem:[#allocation2 + $0x58] sm:$0xff] %vm381_vm3, %v356_v54  ;;  %392 = vst.msk [vmem:[#allocation2 + $0x50] sm:$0xff] %vm381_vm3, %v354_v55 }
  0xef   :  { %v166_v56 = vpop.permute.xlu1 %165  ;;  %v164_v57 = vpop.permute.xlu0 %163  ;;  %v406_v58 = vld [vmem:[#allocation2 + $0x40] sm:$0xff]  ;;  %v407_v59 = vld [vmem:[#allocation2 + $0x48] sm:$0xff] }
  0xf0   :  { %201 = vst.msk [vmem:[#allocation2 + $0x68] sm:$0xff] %vm187_vm1, %v166_v56  ;;  %200 = vst.msk [vmem:[#allocation2 + $0x60] sm:$0xff] %vm187_vm1, %v164_v57  ;;  %v418_v60 = vpack.c.bf16 %v407_v59, %v406_v58 }
  0xf2   :  { %919 = vmatprep.mubr.bf16.mxu0 %v418_v60 }
  0xf3   :  { %v170_v61 = vpop.permute.xlu1 %169  ;;  %v168_v62 = vpop.permute.xlu0 %167  ;;  %v408_v63 = vld [vmem:[#allocation2 + $0x50] sm:$0xff]  ;;  %v409_v0 = vld [vmem:[#allocation2 + $0x58] sm:$0xff] }
  0xf4   :  { %203 = vst.msk [vmem:[#allocation2 + $0x78] sm:$0xff] %vm187_vm1, %v170_v61  ;;  %202 = vst.msk [vmem:[#allocation2 + $0x70] sm:$0xff] %vm187_vm1, %v168_v62  ;;  %v419_v1 = vpack.c.bf16 %v409_v0, %v408_v63 }
  0xf6   :  { %920 = vmatmul.mubr.bf16.gmra.mxu0 %v419_v1 }
  0xf7   :  { %v263_v2 = vpop.permute.xlu1 %262  ;;  %v261_v3 = vpop.permute.xlu0 %260 }
  0xf8   :  { %298 = vst.msk [vmem:[#allocation2 + $0x68] sm:$0xff] %vm284_vm2, %v263_v2  ;;  %297 = vst.msk [vmem:[#allocation2 + $0x60] sm:$0xff] %vm284_vm2, %v261_v3 }
  0xfb   :  { %v267_v4 = vpop.permute.xlu1 %266  ;;  %v265_v5 = vpop.permute.xlu0 %264 }
  0xfc   :  { %300 = vst.msk [vmem:[#allocation2 + $0x78] sm:$0xff] %vm284_vm2, %v267_v4  ;;  %299 = vst.msk [vmem:[#allocation2 + $0x70] sm:$0xff] %vm284_vm2, %v265_v5 }
  0xff   :  { %v360_v6 = vpop.permute.xlu1 %359  ;;  %v358_v7 = vpop.permute.xlu0 %357 }
 0x100   :  { %395 = vst.msk [vmem:[#allocation2 + $0x68] sm:$0xff] %vm381_vm3, %v360_v6  ;;  %394 = vst.msk [vmem:[#allocation2 + $0x60] sm:$0xff] %vm381_vm3, %v358_v7 }
 0x103   :  { %v364_v8 = vpop.permute.xlu1 %363  ;;  %v362_v9 = vpop.permute.xlu0 %361 }
 0x104   :  { %397 = vst.msk [vmem:[#allocation2 + $0x78] sm:$0xff] %vm381_vm3, %v364_v8  ;;  %396 = vst.msk [vmem:[#allocation2 + $0x70] sm:$0xff] %vm381_vm3, %v362_v9 }
 0x107   :  { %v410_v10 = vld [vmem:[#allocation2 + $0x60] sm:$0xff]  ;;  %v411_v11 = vld [vmem:[#allocation2 + $0x68] sm:$0xff] }
 0x108   :  { %v420_v12 = vpack.c.bf16 %v411_v11, %v410_v10 }
 0x10a   :  { %923 = vmatprep.mubr.bf16.mxu0 %v420_v12 }
 0x10b   :  { %v412_v13 = vld [vmem:[#allocation2 + $0x70] sm:$0xff]  ;;  %v413_v14 = vld [vmem:[#allocation2 + $0x78] sm:$0xff] }
 0x10c   :  { %v421_v15 = vpack.c.bf16 %v413_v14, %v412_v13 }
 0x10e   :  { %924 = vmatmul.mubr.bf16.gmra.mxu0 %v421_v15 }
 0x186   :  { %v913_v25 = vpop.f32.mrf.mxu0 }
 0x187   :  { %v587_v37 = vadd.f32 %v913_v25, %v1254_v34 }
 0x188   :  { %v520_v26 = vpop.f32.mrf.mxu0 }
 0x189   :  { %v585_v43 = vadd.f32 %v1254_v34, %v520_v26 }
 0x18a   :  { %v914_v27 = vpop.f32.mrf.mxu0 }
 0x18b   :  { %v588_v35 = vadd.f32 %v914_v27, %v1252_v32 }
 0x18c   :  { %v523_v28 = vpop.f32.mrf.mxu0 }
 0x18d   :  { %v608_v39 = vmax.f32 %v587_v37, %v588_v35  ;;  %v586_v40 = vadd.f32 %v1252_v32, %v523_v28 }
 0x18f   :  { %v609_v46 = vrot.slane %v608_v39, 4  ;;  %v601_v47 = vmax.f32 %v585_v43, %v586_v40 }
 0x191   :  { %v610_v56 = vmax.f32 %v608_v39, %v609_v46  ;;  %v602_v57 = vrot.slane %v601_v47, 4 }
 0x193   :  { %v611_v0 = vrot.slane %v610_v56, 2  ;;  %v603_v1 = vmax.f32 %v601_v47, %v602_v57 }
 0x195   :  { %v612_v6 = vmax.f32 %v610_v56, %v611_v0  ;;  %v604_v7 = vrot.slane %v603_v1, 2 }
 0x197   :  { %v613_v12 = vrot.slane %v612_v6, 1  ;;  %v605_v13 = vmax.f32 %v603_v1, %v604_v7 }
 0x199   :  { %v614_v18 = vmax.f32 %v612_v6, %v613_v12  ;;  %v606_v19 = vrot.slane %v605_v13, 1 }
 0x19b   :  { %v663_v27 = vadd.f32 %v860_v21, %v614_v18  ;;  %v607_v28 = vmax.f32 %v605_v13, %v606_v19 }
 0x19d   :  { %v662_v43 = vadd.f32 %v860_v21, %v607_v28 }
 0x19e   :  { %v917_v29 = vpop.f32.mrf.mxu0 }
 0x19f   :  { %v591_v48 = vadd.f32 %v917_v29, %v1254_v34 }
 0x1a0   :  { %v536_v30 = vpop.f32.mrf.mxu0 }
 0x1a1   :  { %v589_v38 = vadd.f32 %v1254_v34, %v536_v30 }
 0x1a2   :  { %v918_v31 = vpop.f32.mrf.mxu0 }
 0x1a3   :  { %v592_v44 = vadd.f32 %v918_v31, %v1252_v32 }
 0x1a4   :  { %v539_v33 = vpop.f32.mrf.mxu0 }
 0x1a5   :  { %v590_v36 = vadd.f32 %v1252_v32, %v539_v33  ;;  %v622_v51 = vmax.f32 %v591_v48, %v592_v44 }
 0x1a7   :  { %v615_v42 = vmax.f32 %v589_v38, %v590_v36  ;;  %v623_v61 = vrot.slane %v622_v51, 4 }
 0x1a9   :  { %v616_v50 = vrot.slane %v615_v42, 4  ;;  %v624_v4 = vmax.f32 %v622_v51, %v623_v61 }
 0x1ab   :  { %v617_v59 = vmax.f32 %v615_v42, %v616_v50  ;;  %v625_v10 = vrot.slane %v624_v4, 2  ;;  %v671_v42 = vmax.f32 %v663_v27, 0.0 }
 0x1ad   :  { %v618_v2 = vrot.slane %v617_v59, 2  ;;  %v626_v16 = vmax.f32 %v624_v4, %v625_v10 }
 0x1af   :  { %v619_v8 = vmax.f32 %v617_v59, %v618_v2  ;;  %v627_v24 = vrot.slane %v626_v16, 1 }
 0x1b1   :  { %v620_v14 = vrot.slane %v619_v8, 1  ;;  %v628_v36 = vmax.f32 %v626_v16, %v627_v24 }
 0x1b3   :  { %v621_v22 = vmax.f32 %v619_v8, %v620_v14  ;;  %v665_v48 = vadd.f32 %v860_v21, %v628_v36 }
 0x1b5   :  { %v664_v30 = vadd.f32 %v860_v21, %v621_v22 }
 0x1b6   :  { %v921_v41 = vpop.f32.mrf.mxu0 }
 0x1b7   :  { %v595_v58 = vadd.f32 %v921_v41, %v1254_v34  ;;  %v672_v44 = vmax.f32 %v664_v30, 0.0 }
 0x1b8   :  { %v552_v45 = vpop.f32.mrf.mxu0 }
 0x1b9   :  { %v593_v54 = vadd.f32 %v1254_v34, %v552_v45 }
 0x1ba   :  { %v922_v49 = vpop.f32.mrf.mxu0 }
 0x1bb   :  { %v596_v52 = vadd.f32 %v922_v49, %v1252_v32 }
 0x1bc   :  { %v555_v53 = vpop.f32.mrf.mxu0 }
 0x1bd   :  { %v594_v55 = vadd.f32 %v1252_v32, %v555_v53  ;;  %v636_v62 = vmax.f32 %v595_v58, %v596_v52  ;;  %v679_v52 = vpack.c.bf16 %v671_v42, %v671_v42  ;;  %v670_v53 = vmax.f32 %v662_v43, 0.0 }
 0x1bf   :  { %v629_v60 = vmax.f32 %v593_v54, %v594_v55  ;;  %v637_v5 = vrot.slane %v636_v62, 4  ;;  %v680_v54 = vpack.c.bf16 %v672_v44, %v672_v44  ;;  %v678_v61 = vpack.c.bf16 %v670_v53, %v670_v53 }
 0x1c1   :  { %v630_v63 = vrot.slane %v629_v60, 4  ;;  %v638_v11 = vmax.f32 %v636_v62, %v637_v5  ;;  %v717_v62 = vunpack.c.l.b16 %v680_v54  ;;  %v715_v7 = vunpack.c.l.b16 %v678_v61 }
 0x1c3   :  { %v631_v3 = vmax.f32 %v629_v60, %v630_v63  ;;  %v639_v17 = vrot.slane %v638_v11, 2  ;;  %v716_v60 = vunpack.c.l.b16 %v679_v52  ;;  %v726_v8 = vrot.slane %v717_v62, 6 }
 0x1c5   :  { %v632_v9 = vrot.slane %v631_v3, 2  ;;  %v640_v25 = vmax.f32 %v638_v11, %v639_v17  ;;  %v723_v6 = vrot.slane %v716_v60, 7 }
 0x1c7   :  { %v633_v15 = vmax.f32 %v631_v3, %v632_v9  ;;  %v641_v37 = vrot.slane %v640_v25, 1  ;;  %v725_v16 = vsel %vm724_vm5, %v723_v6, %v715_v7 }
 0x1c9   :  { %v634_v23 = vrot.slane %v633_v15, 1  ;;  %v642_v49 = vmax.f32 %v640_v25, %v641_v37  ;;  %v861_v37 = vld [vmem:[#allocation9 + $0x18] ss:$0 sm:$0xff] }
 0x1cb   :  { %v635_v31 = vmax.f32 %v633_v15, %v634_v23  ;;  %v667_v58 = vadd.f32 %v860_v21, %v642_v49 }
 0x1cd   :  { %v666_v45 = vadd.f32 %v860_v21, %v635_v31  ;;  %v675_v3 = vmax.f32 %v667_v58, 0.0 }
 0x1ce   :  { %v925_v20 = vpop.f32.mrf.mxu0 }
 0x1cf   :  { %v599_v33 = vadd.f32 %v925_v20, %v1254_v34  ;;  %v674_v55 = vmax.f32 %v666_v45, 0.0  ;;  %v683_v13 = vpack.c.bf16 %v675_v3, %v675_v3  ;;  %v728_v20 = vsel %vm727_vm6, %v726_v8, %v725_v16 }
 0x1d0   :  { %v568_v26 = vpop.f32.mrf.mxu0 }
 0x1d1   :  { %v597_v39 = vadd.f32 %v1254_v34, %v568_v26  ;;  %v673_v34 = vmax.f32 %v665_v48, 0.0  ;;  %v682_v63 = vpack.c.bf16 %v674_v55, %v674_v55  ;;  %v720_v23 = vunpack.c.l.b16 %v683_v13 }
 0x1d2   :  { %v926_v29 = vpop.f32.mrf.mxu0 }
 0x1d3   :  { %v600_v35 = vadd.f32 %v926_v29, %v1252_v32  ;;  %v681_v2 = vpack.c.bf16 %v673_v34, %v673_v34  ;;  %v719_v9 = vunpack.c.l.b16 %v682_v63  ;;  %v735_v29 = vrot.slane %v720_v23, 3 }
 0x1d4   :  { %v571_v38 = vpop.f32.mrf.mxu0 }
 0x1d5   :  { %v650_v40 = vmax.f32 %v599_v33, %v600_v35  ;;  %v598_v41 = vadd.f32 %v1252_v32, %v571_v38  ;;  %v718_v12 = vunpack.c.l.b16 %v681_v2  ;;  %v732_v17 = vrot.slane %v719_v9, 4 }
 0x1d7   :  { %v651_v46 = vrot.slane %v650_v40, 4  ;;  %v643_v47 = vmax.f32 %v597_v39, %v598_v41  ;;  %v729_v22 = vrot.slane %v718_v12, 5 }
 0x1d9   :  { %v652_v50 = vmax.f32 %v650_v40, %v651_v46  ;;  %v644_v51 = vrot.slane %v643_v47, 4  ;;  %v731_v26 = vsel %vm730_vm7, %v729_v22, %v728_v20 }
 0x1da   :  { %v734_v28 = vsel %vm733_vm8, %v732_v17, %v731_v26 }
 0x1db   :  { %v653_v56 = vrot.slane %v652_v50, 2  ;;  %v645_v57 = vmax.f32 %v643_v47, %v644_v51 }
 0x1dd   :  { %v654_v59 = vmax.f32 %v652_v50, %v653_v56  ;;  %v646_v32 = vrot.slane %v645_v57, 2 }
 0x1df   :  { %v655_v0 = vrot.slane %v654_v59, 1  ;;  %v647_v1 = vmax.f32 %v645_v57, %v646_v32 }
 0x1e1   :  { %v656_v4 = vmax.f32 %v654_v59, %v655_v0  ;;  %v648_v5 = vrot.slane %v647_v1, 1 }
 0x1e3   :  { %v669_v10 = vadd.f32 %v860_v21, %v656_v4  ;;  %v649_v11 = vmax.f32 %v647_v1, %v648_v5 }
 0x1e5   :  { %v668_v14 = vadd.f32 %v860_v21, %v649_v11  ;;  %v677_v15 = vmax.f32 %v669_v10, 0.0  ;;  %v737_v21 = vsel %vm736_vm9, %v735_v29, %v734_v28 }
 0x1e7   :  { %v676_v18 = vmax.f32 %v668_v14, 0.0  ;;  %v685_v19 = vpack.c.bf16 %v677_v15, %v677_v15 }
 0x1e9   :  { %v684_v24 = vpack.c.bf16 %v676_v18, %v676_v18  ;;  %v722_v25 = vunpack.c.l.b16 %v685_v19 }
 0x1eb   :  { %v721_v27 = vunpack.c.l.b16 %v684_v24  ;;  %v741_v31 = vrot.slane %v722_v25, 1 }
 0x1ed   :  { %v738_v30 = vrot.slane %v721_v27, 2 }
 0x1ef   :  { %v740_v33 = vsel %vm739_vm10, %v738_v30, %v737_v21 }
 0x1f0   :  { %v743_v35 = vsel %vm742_vm11, %v741_v31, %v740_v33 }
 0x1f1   :  { %v744_v36 = vpack.c.b16 %v743_v35, %v743_v35 }
 0x1f3   :  { %944 = vmatmul.mubr.bf16.vlgmr.msra.gmra.mxu1 %v744_v36 }
 0x2b3   :  { %v828_v38 = vpop.f32.mrf.mxu1 }
 0x2b4   :  { %v829_v39 = vadd.f32 %v861_v37, %v828_v38 }
 0x2b5   :  { %v945_v40 = vpop.f32.mrf.mxu1 }
 0x2b6   :  { %834 = vst [vmem:[#allocation11] sm:$0xff] %v829_v39 }
 0x2b7   :  { %v831_v41 = vpop.f32.mrf.mxu1 }
 0x2b8   :  { %1067 = shalt.err (!%p1064_p10)
}
 0x2b9   :  { %844 = dma.vmem_to_hbm [thread:$0]  %s842_s12, 128, %s1279_s4, [#allocation5]   ;;  %v946_v42 = vpop.f32.mrf.mxu1 }
 0x2ba   :  { %1082 = dma.done.wait [#allocation5], 128  }
 0x2bb   :  { %1083 = vsyncadd [#allocation5], 4294967168 }
 0x2bc   :  { %848 = vsyncpa [#allocation4], 1 }
 0x2bd   :  { %849 = vsyncpa [#allocation7], 1 }
 0x2be   :  { %850 = vsyncpa [#allocation10], 1 }
 0x2bf   :  { %851 = vsyncpa [#allocation5], 1 }

</bundles_post_ra>
